<compile_context>
chip_gen: v7x
topology: tpu7x:2x2x1
jax: 0.10.0
libtpu: 0.0.40
codegen_flags: <defaults>
</compile_context>

<pallas_src>
import math
import functools

import jax
import jax.numpy as jnp
from jax.experimental import pallas as pl
from jax.experimental.pallas import tpu as pltpu


EPS_DEFAULT = 1e-4
LANE = 128


def _mvd_nll_kernel(pred_ref, tgt_ref, logstd_ref, logmix_ref, *out_refs,
                    eps, n_valid, tile_rows, lane, emit_pixels, masked):
    # pred_ref/logstd_ref: (M|1, D, TR, L); tgt_ref: (1, D, TR, L); logmix_ref: (M, TR, L)
    if emit_pixels:
        loss_ref, stats_ref = out_refs
    else:
        (stats_ref,) = out_refs

    pred = pred_ref[...].astype(jnp.float32)      # (M, D, TR, L)
    tgt = tgt_ref[...].astype(jnp.float32)        # (1, D, TR, L)
    logstd = logstd_ref[...].astype(jnp.float32)  # (Ml, D, TR, L)
    logmix = logmix_ref[...].astype(jnp.float32)  # (M, TR, L)

    # abs() dropped: the value is only squared in the delta<0 path (|x|^2 == x^2).
    diff = pred - tgt                                           # (M, D, TR, L)
    inv_std = jnp.minimum(jnp.exp(-logstd), 1.0 / eps)          # clamp(max=1/eps)
    dw = diff * inv_std
    dwsq = jnp.sum(dw * dw, axis=1)                             # (M, TR, L)
    logstd_sum = jnp.sum(logstd, axis=1)                        # (Ml, TR, L)

    # delta < 0 path (pure Gaussian mixture NLL)
    loss_comp = -0.5 * dwsq + logmix - logstd_sum               # (M, TR, L)

    # -logsumexp over mixture components (leading axis -> unrolled VPU max/add)
    m = jnp.max(loss_comp, axis=0)                              # (TR, L)
    sexp = jnp.sum(jnp.exp(loss_comp - m[None]), axis=0)        # (TR, L)
    loss_px = -(m + jnp.log(sexp))                              # (TR, L)

    # partial sums for adaptive weight:
    #   sum_{m,d} inv_std * mixweight   and   sum_m mixweight
    w = jnp.exp(logmix)                                         # (M, TR, L)
    isw = jnp.sum(inv_std, axis=1) * w                          # (M, TR, L)

    if masked:
        # mask out padded pixels (pixel index >= n_valid)
        row = jax.lax.broadcasted_iota(jnp.int32, (tile_rows, lane), 0)
        col = jax.lax.broadcasted_iota(jnp.int32, (tile_rows, lane), 1)
        idx = (pl.program_id(0) * tile_rows + row) * lane + col
        valid = (idx < n_valid).astype(jnp.float32)             # (TR, L)
        loss_blk = loss_px * valid
        w = w * valid[None]
        isw = isw * valid[None]
    else:
        loss_blk = loss_px

    s_loss = jnp.sum(loss_blk, axis=0)                          # (L,)
    s_isw = jnp.sum(isw, axis=(0, 1))                           # (L,)
    s_w = jnp.sum(w, axis=(0, 1))                               # (L,)

    stats_tile = jnp.concatenate(
        [s_loss.reshape(1, lane),
         s_isw.reshape(1, lane),
         s_w.reshape(1, lane),
         jnp.zeros((5, lane), jnp.float32)], axis=0)            # (8, L), dense store
    stats_ref[...] = stats_tile.reshape(1, 8, lane)

    if emit_pixels:
        loss_ref[...] = loss_px


def _run_kernel(pred_t, tgt_t, logstd_t, logmix_t, *, eps, n_valid,
                emit_pixels, tile_rows):
    M, D, NR, L = pred_t.shape
    Ml = logstd_t.shape[0]
    assert NR % tile_rows == 0
    num_blocks = NR // tile_rows

    kernel = functools.partial(
        _mvd_nll_kernel, eps=eps, n_valid=n_valid, tile_rows=tile_rows,
        lane=L, emit_pixels=emit_pixels, masked=(NR * L != n_valid))

    stats_shape = jax.ShapeDtypeStruct((num_blocks, 8, L), jnp.float32)
    stats_spec = pl.BlockSpec((1, 8, L), lambda i: (i, 0, 0))
    if emit_pixels:
        out_shape = (jax.ShapeDtypeStruct((NR, L), jnp.float32), stats_shape)
        out_specs = (pl.BlockSpec((tile_rows, L), lambda i: (i, 0)), stats_spec)
    else:
        out_shape = stats_shape
        out_specs = stats_spec

    return pl.pallas_call(
        kernel,
        out_shape=out_shape,
        grid=(num_blocks,),
        in_specs=[
            pl.BlockSpec((M, D, tile_rows, L), lambda i: (0, 0, i, 0)),
            pl.BlockSpec((1, D, tile_rows, L), lambda i: (0, 0, i, 0)),
            pl.BlockSpec((Ml, D, tile_rows, L), lambda i: (0, 0, i, 0)),
            pl.BlockSpec((M, tile_rows, L), lambda i: (0, i, 0)),
        ],
        out_specs=out_specs,
        compiler_params=pltpu.CompilerParams(
            dimension_semantics=("parallel",)),
    )(pred_t, tgt_t, logstd_t, logmix_t)


class MVDGaussianMixtureNLLLoss:
    """JAX/Pallas port of the PyTorch module (forward only)."""

    def __init__(self, dim=1, reduction='mean', loss_weight=1.0,
                 adaptive_weight=True, sigma=None, freeze_sigma=True,
                 momentum=0.1, delta=-1, eps=EPS_DEFAULT, max_tile_rows=512):
        assert dim == 1, "kernel assumes mixture dim = 1"
        assert delta < 0, "only delta < 0 (pure Gaussian NLL) path implemented"
        self.reduction = reduction
        self.loss_weight = loss_weight
        self.adaptive_weight = adaptive_weight
        self.log_sigma = None if sigma is None else math.log(sigma)
        self.freeze_sigma = freeze_sigma
        self.momentum = momentum
        self.delta = delta
        self.eps = eps
        self.dim = dim
        self.training = True
        # 512 rows * 128 lanes = 64K pixels / block (~few MiB double-buffered);
        # fits the scoped VMEM default on v5e/v6e/v7x.
        self.max_tile_rows = max_tile_rows
        # buffer, analogous to register_buffer('mean_inv_std', tensor(1.))
        # NOTE: mutated Python-side; do not jit across __call__ if the buffer
        # update must stay stateful (matches the torch buffer semantics).
        self.mean_inv_std = jnp.float32(1.0) if adaptive_weight else None

    def __call__(self, pred, target, logstd=None, logmixweight=None,
                 weight=None, avg_factor=None, reduction_override=None):
        assert reduction_override in (None, 'none', 'mean', 'sum')
        reduction = reduction_override if reduction_override else self.reduction
        # TODO(synk): elementwise `weight` / `avg_factor` weighted reduction not implemented.
        assert weight is None and avg_factor is None

        n, M, h, w, D = pred.shape
        N = n * h * w

        # ---- tiling choice: pixels onto (sublane rows, 128 lanes) ----
        nr = -(-N // LANE)                       # cdiv(N, 128)
        if nr <= self.max_tile_rows:
            tile_rows = nr                       # single block, full-dim block shape
            nr_pad = nr
        else:
            tile_rows = self.max_tile_rows       # multiple of 8
            nr_pad = -(-nr // tile_rows) * tile_rows
        n_pad = nr_pad * LANE

        # ---- layout transform (glue) ----
        # TODO(synk): these transposes are an extra HBM pass over every input;
        # ideally the producer emits (M, D, pixels) directly, or the transpose is
        # fused into the pallas_call operand via allow_input_fusion.
        def to_lanes(x_flat):
            if n_pad != N:
                pad = [(0, 0)] * (x_flat.ndim - 1) + [(0, n_pad - N)]
                x_flat = jnp.pad(x_flat, pad)
            return x_flat.reshape(*x_flat.shape[:-1], nr_pad, LANE)

        pred_t = to_lanes(jnp.transpose(pred, (1, 4, 0, 2, 3)).reshape(M, D, N))
        tgt_t = to_lanes(jnp.transpose(target, (1, 4, 0, 2, 3)).reshape(1, D, N))
        logmix_t = to_lanes(jnp.transpose(logmixweight, (1, 0, 2, 3)).reshape(M, N))
        if self.log_sigma is not None:
            # TODO(synk): fold constant logstd into the kernel as scalars instead
            # of materializing a broadcast array.
            logstd_t = jnp.full((1, D, nr_pad, LANE), self.log_sigma, jnp.float32)
        else:
            logstd_t = to_lanes(
                jnp.transpose(logstd, (1, 4, 0, 2, 3)).reshape(M, D, N))

        # ---- Pallas hot path ----
        emit_pixels = (reduction == 'none')
        outs = _run_kernel(pred_t, tgt_t, logstd_t, logmix_t,
                           eps=self.eps, n_valid=N,
                           emit_pixels=emit_pixels, tile_rows=tile_rows)
        if emit_pixels:
            loss_px_flat, stats = outs
        else:
            stats = outs

        # ---- adaptive weight buffer update (tiny per-block stats, scalar glue) ----
        if self.adaptive_weight:
            if self.training:
                s_isw = jnp.sum(stats[:, 1, :])     # sum(inverse_std * mixweight)
                s_w = jnp.sum(stats[:, 2, :])       # sum(mixweight)
                batch_mis = s_isw / jnp.maximum(s_w * D, self.eps)
                self.mean_inv_std = (self.mean_inv_std * (1.0 - self.momentum)
                                     + self.momentum * batch_mis)
            denom = jnp.maximum(self.mean_inv_std, self.eps)
        else:
            denom = jnp.float32(1.0)

        # ---- reduction (weight=None) ----
        if reduction == 'none':
            loss = loss_px_flat.reshape(-1)[:N].reshape(n, h, w) / denom
        elif reduction == 'sum':
            loss = jnp.sum(stats[:, 0, :]) / denom
        else:  # 'mean'
            loss = jnp.sum(stats[:, 0, :]) / (denom * N)
        return self.loss_weight * loss


# ---------------- pure-JAX reference (mirrors the torch code) ----------------
def _reference(pred, target, logstd, logmixweight, mean_inv_std,
               momentum=0.1, eps=EPS_DEFAULT):
    diff = jnp.abs(pred - target)
    inverse_std = jnp.minimum(jnp.exp(-logstd), 1.0 / eps)
    dw = diff * inverse_std
    dwsq = jnp.sum(dw * dw, axis=-1)
    loss_comp = -0.5 * dwsq + logmixweight - jnp.sum(logstd, axis=-1)
    loss = -jax.scipy.special.logsumexp(loss_comp, axis=1)          # (n, h, w)
    mixweight = jnp.exp(logmixweight)[..., None]
    batch_mis = jnp.sum(inverse_std * mixweight) / jnp.maximum(
        jnp.sum(mixweight) * inverse_std.shape[-1], eps)
    new_mis = mean_inv_std * (1.0 - momentum) + momentum * batch_mis
    loss = loss / jnp.maximum(new_mis, eps)
    return loss, new_mis


if __name__ == "__main__":
    # ---- test 1: defaults (reduction='mean'), pixel count divisible by 128 ----
    key = jax.random.PRNGKey(0)
    n, M, h, w, D = 2, 4, 16, 16, 2
    k1, k2, k3, k4 = jax.random.split(key, 4)
    pred = jax.random.normal(k1, (n, M, h, w, D), dtype=jnp.float32)
    target = jax.random.normal(k2, (n, 1, h, w, D), dtype=jnp.float32)
    logstd = 0.3 * jax.random.normal(k3, (n, M, h, w, D), dtype=jnp.float32)
    logmixweight = jax.nn.log_softmax(
        jax.random.normal(k4, (n, M, h, w), dtype=jnp.float32), axis=1)

    module = MVDGaussianMixtureNLLLoss(dim=1, reduction='mean', loss_weight=1.0,
                                       adaptive_weight=True, momentum=0.1,
                                       delta=-1, eps=EPS_DEFAULT)
    loss = module(pred, target, logstd=logstd, logmixweight=logmixweight)
    loss = jax.block_until_ready(loss)

    ref_px, ref_mis = _reference(pred, target, logstd, logmixweight, jnp.float32(1.0))
    assert jnp.allclose(loss, jnp.mean(ref_px), rtol=1e-5, atol=1e-5), (loss, jnp.mean(ref_px))
    assert jnp.allclose(module.mean_inv_std, ref_mis, rtol=1e-5, atol=1e-6)

    # ---- test 2: padding + multi-block tiling + reduction='none' ----
    n, M, h, w, D = 1, 3, 40, 33, 3          # N = 1320 -> padded/masked path
    k1, k2, k3, k4 = jax.random.split(jax.random.PRNGKey(1), 4)
    pred2 = jax.random.normal(k1, (n, M, h, w, D), dtype=jnp.float32)
    target2 = jax.random.normal(k2, (n, 1, h, w, D), dtype=jnp.float32)
    logstd2 = 0.2 * jax.random.normal(k3, (n, M, h, w, D), dtype=jnp.float32)
    logmix2 = jax.random.normal(k4, (n, M, h, w), dtype=jnp.float32)

    module2 = MVDGaussianMixtureNLLLoss(max_tile_rows=8)   # force 2-block grid
    loss_none = module2(pred2, target2, logstd=logstd2, logmixweight=logmix2,
                        reduction_override='none')
    loss_none = jax.block_until_ready(loss_none)

    ref_px2, ref_mis2 = _reference(pred2, target2, logstd2, logmix2, jnp.float32(1.0))
    assert loss_none.shape == (n, h, w)
    assert jnp.allclose(loss_none, ref_px2, rtol=1e-5, atol=1e-5)
    assert jnp.allclose(module2.mean_inv_std, ref_mis2, rtol=1e-5, atol=1e-6)

    print("KERNEL_OK")
</pallas_src>

<mosaic_0001>
module attributes {stable_mosaic.version = 11 : i64} {
  func.func @_mvd_nll_kernel(%arg0: i32, %arg1: memref<4x2x4x128xf32, #tpu.memory_space<vmem>>, %arg2: memref<1x2x4x128xf32, #tpu.memory_space<vmem>>, %arg3: memref<4x2x4x128xf32, #tpu.memory_space<vmem>>, %arg4: memref<4x4x128xf32, #tpu.memory_space<vmem>>, %arg5: memref<1x8x128xf32, #tpu.memory_space<vmem>>) attributes {dimension_semantics = [#tpu.dimension_semantics<parallel>], iteration_bounds = array<i64: 1>, scalar_prefetch = 0 : i64, scratch_operands = 0 : i64, tpu.core_type = #tpu.core_type<tc>, window_params = [{transform_indices = @transform_0, window_bounds = array<i64: 4, 2, 4, 128>}, {transform_indices = @transform_1, window_bounds = array<i64: 1, 2, 4, 128>}, {transform_indices = @transform_2, window_bounds = array<i64: 4, 2, 4, 128>}, {transform_indices = @transform_3, window_bounds = array<i64: 4, 4, 128>}, {transform_indices = @transform_4, window_bounds = array<i64: 1, 8, 128>}]} {
    %c0 = arith.constant 0 : index
    %c0_0 = arith.constant 0 : index
    %c0_1 = arith.constant 0 : index
    %c0_2 = arith.constant 0 : index
    %0 = vector.load %arg1[%c0, %c0_0, %c0_1, %c0_2] : memref<4x2x4x128xf32, #tpu.memory_space<vmem>>, vector<4x2x4x128xf32>
    %c0_3 = arith.constant 0 : index
    %c0_4 = arith.constant 0 : index
    %c0_5 = arith.constant 0 : index
    %c0_6 = arith.constant 0 : index
    %1 = vector.load %arg2[%c0_3, %c0_4, %c0_5, %c0_6] : memref<1x2x4x128xf32, #tpu.memory_space<vmem>>, vector<1x2x4x128xf32>
    %c0_7 = arith.constant 0 : index
    %c0_8 = arith.constant 0 : index
    %c0_9 = arith.constant 0 : index
    %c0_10 = arith.constant 0 : index
    %2 = vector.load %arg3[%c0_7, %c0_8, %c0_9, %c0_10] : memref<4x2x4x128xf32, #tpu.memory_space<vmem>>, vector<4x2x4x128xf32>
    %c0_11 = arith.constant 0 : index
    %c0_12 = arith.constant 0 : index
    %c0_13 = arith.constant 0 : index
    %3 = vector.load %arg4[%c0_11, %c0_12, %c0_13] : memref<4x4x128xf32, #tpu.memory_space<vmem>>, vector<4x4x128xf32>
    %4 = vector.broadcast %1 : vector<1x2x4x128xf32> to vector<4x2x4x128xf32>
    %5 = arith.subf %0, %4 : vector<4x2x4x128xf32>
    %cst = arith.constant 0.000000e+00 : f32
    %6 = vector.broadcast %cst : f32 to vector<4x2x4x128xf32>
    %7 = arith.subf %6, %2 : vector<4x2x4x128xf32>
    %8 = math.exp %7 : vector<4x2x4x128xf32>
    %cst_14 = arith.constant 1.000000e+04 : f32
    %9 = vector.broadcast %cst_14 : f32 to vector<4x2x4x128xf32>
    %10 = arith.minimumf %8, %9 : vector<4x2x4x128xf32>
    %11 = arith.mulf %5, %10 : vector<4x2x4x128xf32>
    %12 = arith.mulf %11, %11 : vector<4x2x4x128xf32>
    %cst_15 = arith.constant dense<0.000000e+00> : vector<4x4x128xf32>
    %13 = vector.multi_reduction <add>, %12, %cst_15 [1] : vector<4x2x4x128xf32> to vector<4x4x128xf32>
    %cst_16 = arith.constant dense<0.000000e+00> : vector<4x4x128xf32>
    %14 = vector.multi_reduction <add>, %2, %cst_16 [1] : vector<4x2x4x128xf32> to vector<4x4x128xf32>
    %cst_17 = arith.constant -5.000000e-01 : f32
    %15 = vector.broadcast %cst_17 : f32 to vector<4x4x128xf32>
    %16 = arith.mulf %15, %13 : vector<4x4x128xf32>
    %17 = arith.addf %16, %3 : vector<4x4x128xf32>
    %18 = arith.subf %17, %14 : vector<4x4x128xf32>
    %cst_18 = arith.constant dense<0xFF800000> : vector<4x128xf32>
    %19 = vector.multi_reduction <maximumf>, %18, %cst_18 [0] : vector<4x4x128xf32> to vector<4x128xf32>
    %20 = vector.shape_cast %19 : vector<4x128xf32> to vector<1x4x128xf32>
    %21 = vector.broadcast %20 : vector<1x4x128xf32> to vector<4x4x128xf32>
    %22 = arith.subf %18, %21 : vector<4x4x128xf32>
    %23 = math.exp %22 : vector<4x4x128xf32>
    %cst_19 = arith.constant dense<0.000000e+00> : vector<4x128xf32>
    %24 = vector.multi_reduction <add>, %23, %cst_19 [0] : vector<4x4x128xf32> to vector<4x128xf32>
    %25 = math.log %24 : vector<4x128xf32>
    %26 = arith.addf %19, %25 : vector<4x128xf32>
    %cst_20 = arith.constant 0.000000e+00 : f32
    %27 = vector.broadcast %cst_20 : f32 to vector<4x128xf32>
    %28 = arith.subf %27, %26 : vector<4x128xf32>
    %29 = math.exp %3 : vector<4x4x128xf32>
    %cst_21 = arith.constant dense<0.000000e+00> : vector<4x4x128xf32>
    %30 = vector.multi_reduction <add>, %10, %cst_21 [1] : vector<4x2x4x128xf32> to vector<4x4x128xf32>
    %31 = arith.mulf %30, %29 : vector<4x4x128xf32>
    %cst_22 = arith.constant dense<0.000000e+00> : vector<128xf32>
    %32 = vector.multi_reduction <add>, %28, %cst_22 [0] : vector<4x128xf32> to vector<128xf32>
    %cst_23 = arith.constant dense<0.000000e+00> : vector<128xf32>
    %33 = vector.multi_reduction <add>, %31, %cst_23 [0, 1] : vector<4x4x128xf32> to vector<128xf32>
    %cst_24 = arith.constant dense<0.000000e+00> : vector<128xf32>
    %34 = vector.multi_reduction <add>, %29, %cst_24 [0, 1] : vector<4x4x128xf32> to vector<128xf32>
    %35 = vector.shape_cast %32 : vector<128xf32> to vector<1x128xf32>
    %36 = vector.shape_cast %33 : vector<128xf32> to vector<1x128xf32>
    %37 = vector.shape_cast %34 : vector<128xf32> to vector<1x128xf32>
    %cst_25 = arith.constant 0.000000e+00 : f32
    %38 = vector.broadcast %cst_25 : f32 to vector<5x128xf32>
    %39 = tpu.concatenate %35, %36, %37, %38 in 0 : vector<1x128xf32>, vector<1x128xf32>, vector<1x128xf32>, vector<5x128xf32> -> vector<8x128xf32>
    %40 = vector.shape_cast %39 : vector<8x128xf32> to vector<1x8x128xf32>
    %c0_26 = arith.constant 0 : index
    %c0_27 = arith.constant 0 : index
    %c0_28 = arith.constant 0 : index
    %41 = vector.load %arg5[%c0_26, %c0_27, %c0_28] : memref<1x8x128xf32, #tpu.memory_space<vmem>>, vector<1x8x128xf32>
    tpu.vector_store %arg5[%c0_26, %c0_27, %c0_28], %40 {strides = array<i32>} : memref<1x8x128xf32, #tpu.memory_space<vmem>>, vector<1x8x128xf32>,
    return
  }
  func.func @transform_0(%arg0: i32) -> (i32, i32, i32, i32) {
    %c0_i32 = arith.constant 0 : i32
    %c0_i32_0 = arith.constant 0 : i32
    %c0_i32_1 = arith.constant 0 : i32
    %c0_i32_2 = arith.constant 0 : i32
    return %c0_i32, %c0_i32_0, %arg0, %c0_i32_1 : i32, i32, i32, i32
  }
  func.func @transform_1(%arg0: i32) -> (i32, i32, i32, i32) {
    %c0_i32 = arith.constant 0 : i32
    %c0_i32_0 = arith.constant 0 : i32
    %c0_i32_1 = arith.constant 0 : i32
    %c0_i32_2 = arith.constant 0 : i32
    return %c0_i32, %c0_i32_0, %arg0, %c0_i32_1 : i32, i32, i32, i32
  }
  func.func @transform_2(%arg0: i32) -> (i32, i32, i32, i32) {
    %c0_i32 = arith.constant 0 : i32
    %c0_i32_0 = arith.constant 0 : i32
    %c0_i32_1 = arith.constant 0 : i32
    %c0_i32_2 = arith.constant 0 : i32
    return %c0_i32, %c0_i32_0, %arg0, %c0_i32_1 : i32, i32, i32, i32
  }
  func.func @transform_3(%arg0: i32) -> (i32, i32, i32) {
    %c0_i32 = arith.constant 0 : i32
    %c0_i32_0 = arith.constant 0 : i32
    %c0_i32_1 = arith.constant 0 : i32
    return %c0_i32, %arg0, %c0_i32_0 : i32, i32, i32
  }
  func.func @transform_4(%arg0: i32) -> (i32, i32, i32) {
    %c0_i32 = arith.constant 0 : i32
    %c0_i32_0 = arith.constant 0 : i32
    %c0_i32_1 = arith.constant 0 : i32
    return %arg0, %c0_i32, %c0_i32_0 : i32, i32, i32
  }
}

</mosaic_0001>

<bundles_post_ra>
// kernel: tpu_custom_call.1
= control target key start
LH: loop header
LB: loop body
LE: loop exit
PB: predicated region body
PF: predicated region fallthrough
CT: control target
= control target key end

     0   :  { %9 = vsyncpa [#allocation3], 0  ;;  %s696_s0 = inlined_call_operand.hbm [shape: f32[4,2,4,128], index: 0, kind: input, shape index: {}]   ;;  %s697_s1 = inlined_call_operand.hbm [shape: f32[1,2,4,128], index: 1, kind: input, shape index: {}]   ;;  %s698_s2 = inlined_call_operand.hbm [shape: f32[4,2,4,128], index: 2, kind: input, shape index: {}]   ;;  %s699_s3 = inlined_call_operand.hbm [shape: f32[4,4,128], index: 3, kind: input, shape index: {}]   ;;  %s700_s4 = inlined_call_operand.hbm [shape: f32[1,8,128], index: 4, kind: output, shape index: {}]  }
   0x1   :  { %10 = vsyncpa [#allocation6], 0 }
   0x2   :  { %11 = vsyncpa [#allocation9], 0 }
   0x3   :  { %12 = vsyncpa [#allocation4], 0  ;;  %s458_s15 = smov [#allocation5]   ;;  %s459_s17 = smov [#allocation2]  }
   0x4   :  { %s30_s16 = sshll.u32 %s458_s15, 4  ;;  %s18_s18 = sshll.u32 %s459_s17, 4  ;;  %s31_s16 = int_to_ptr.vmem [resolvable:$true] %s30_s16  ;;  %s490_s18 = int_to_ptr.vmem [resolvable:$true] %s18_s18 }
   0x5   :  { %s340_s21 = scalar_lea.hbm %s697_s1, 128 }
   0x6   :  { %p341_p0 = scmp.ne.s32.totalorder %s697_s1, %s340_s21  ;;  %p344_p1 = scmp.lt.u32.totalorder %s340_s21, %s697_s1 }
   0x8   :  { %p346_p2 = pnand %p344_p1, %p341_p0 }
   0xa   :  { %349 = shalt.err (!%p346_p2)
}
   0xb   :  { %s350_s26 = scalar_lea.vmem %s31_s16, 128  ;;  %p355_p4 = scmp.lt.s32.totalorder %s31_s16, %s31_s16 }
   0xc   :  { %p351_p3 = scmp.ne.s32.totalorder %s31_s16, %s350_s26  ;;  %p356_p5 = scmp.lt.s32.totalorder %s350_s26, %s350_s26 }
   0xe   :  { %p357_p6 = por %p356_p5, %p355_p4 }
  0x10   :  { %p358_p7 = pnand %p357_p6, %p351_p3 }
  0x12   :  { %361 = shalt.err (!%p358_p7)
}
  0x13   :  { %s460_s27 = smov 64   ;;  %s461_s28 = smov 4  }
  0x14   :  { %36 = dma.hbm_to_vmem [thread:$0]  %s697_s1, 128, %s31_s16, [#allocation6], %s460_s27, %s460_s27, %s461_s28  }
  0x15   :  { %s362_s7 = scalar_lea.hbm %s696_s0, 512 }
  0x16   :  { %p363_p8 = scmp.ne.s32.totalorder %s696_s0, %s362_s7  ;;  %p366_p9 = scmp.lt.u32.totalorder %s362_s7, %s696_s0 }
  0x18   :  { %p368_p10 = pnand %p366_p9, %p363_p8 }
  0x1a   :  { %371 = shalt.err (!%p368_p10)
}
  0x1b   :  { %s372_s12 = scalar_lea.vmem %s490_s18, 512  ;;  %p377_p12 = scmp.lt.s32.totalorder %s490_s18, %s490_s18 }
  0x1c   :  { %p373_p11 = scmp.ne.s32.totalorder %s490_s18, %s372_s12  ;;  %p378_p13 = scmp.lt.s32.totalorder %s372_s12, %s372_s12 }
  0x1e   :  { %p379_p0 = por %p378_p13, %p377_p12 }
  0x20   :  { %p380_p1 = pnand %p379_p0, %p373_p11 }
  0x22   :  { %383 = shalt.err (!%p380_p1)
}
  0x23   :  { %24 = dma.hbm_to_vmem [thread:$0]  %s696_s0, 512, %s490_s18, [#allocation3], %s460_s27, %s460_s27, %s461_s28  }
  0x24   :  { %s462_s14 = smov [#allocation7]   ;;  %s463_s16 = smov [#allocation8]  }
  0x25   :  { %s42_s15 = sshll.u32 %s462_s14, 4  ;;  %s54_s17 = sshll.u32 %s463_s16, 4  ;;  %s43_s15 = int_to_ptr.vmem [resolvable:$true] %s42_s15  ;;  %s527_s17 = int_to_ptr.vmem [resolvable:$true] %s54_s17 }
  0x26   :  { %s384_s21 = scalar_lea.hbm %s698_s2, 512 }
  0x27   :  { %p385_p2 = scmp.ne.s32.totalorder %s698_s2, %s384_s21  ;;  %p388_p3 = scmp.lt.u32.totalorder %s384_s21, %s698_s2 }
  0x29   :  { %p390_p4 = pnand %p388_p3, %p385_p2 }
  0x2b   :  { %393 = shalt.err (!%p390_p4)
}
  0x2c   :  { %s394_s0 = scalar_lea.vmem %s43_s15, 512  ;;  %p399_p6 = scmp.lt.s32.totalorder %s43_s15, %s43_s15 }
  0x2d   :  { %p395_p5 = scmp.ne.s32.totalorder %s43_s15, %s394_s0  ;;  %p400_p7 = scmp.lt.s32.totalorder %s394_s0, %s394_s0 }
  0x2f   :  { %p401_p8 = por %p400_p7, %p399_p6 }
  0x31   :  { %p402_p9 = pnand %p401_p8, %p395_p5 }
  0x33   :  { %405 = shalt.err (!%p402_p9)
}
  0x34   :  { %48 = dma.hbm_to_vmem [thread:$0]  %s698_s2, 512, %s43_s15, [#allocation6], %s460_s27, %s460_s27, %s461_s28  }
  0x35   :  { %s406_s5 = scalar_lea.hbm %s699_s3, 256 }
  0x36   :  { %p407_p10 = scmp.ne.s32.totalorder %s699_s3, %s406_s5  ;;  %p410_p11 = scmp.lt.u32.totalorder %s406_s5, %s699_s3 }
  0x38   :  { %p412_p12 = pnand %p410_p11, %p407_p10 }
  0x3a   :  { %415 = shalt.err (!%p412_p12)
}
  0x3b   :  { %s416_s10 = scalar_lea.vmem %s527_s17, 256  ;;  %p421_p0 = scmp.lt.s32.totalorder %s527_s17, %s527_s17 }
  0x3c   :  { %p417_p13 = scmp.ne.s32.totalorder %s527_s17, %s416_s10  ;;  %p422_p1 = scmp.lt.s32.totalorder %s416_s10, %s416_s10 }
  0x3e   :  { %p423_p2 = por %p422_p1, %p421_p0 }
  0x40   :  { %p424_p3 = pnand %p423_p2, %p417_p13 }
  0x42   :  { %427 = shalt.err (!%p424_p3)
}
  0x43   :  { %60 = dma.hbm_to_vmem [thread:$0]  %s699_s3, 256, %s527_s17, [#allocation9], %s460_s27, %s460_s27, %s461_s28  }
  0x44   :  { %450 = dma.done.wait [#allocation3], 512  }
  0x45   :  { %451 = vsyncadd [#allocation3], 4294966784 }
  0x46   :  { %452 = dma.done.wait [#allocation6], 640  }
  0x47   :  { %453 = vsyncadd [#allocation6], 4294966656 }
  0x48   :  { %454 = dma.done.wait [#allocation9], 256  }
  0x49   :  { %455 = vsyncadd [#allocation9], 4294967040  ;;  %v83_v0 = vld [vmem:[#allocation7] sm:$0xf]  ;;  %v84_v1 = vld [vmem:[#allocation7 + $0x4] sm:$0xf] }
  0x4a   :  { %v85_v2 = vld [vmem:[#allocation7 + $0x8] sm:$0xf]  ;;  %v86_v3 = vld [vmem:[#allocation7 + $0xc] sm:$0xf]  ;;  %v564_v4 = vld [vmem:[#allocation7 + $0x10] sm:$0xf] }
  0x4b   :  { %v566_v5 = vld [vmem:[#allocation7 + $0x14] sm:$0xf]  ;;  %v568_v6 = vld [vmem:[#allocation7 + $0x18] sm:$0xf]  ;;  %v570_v7 = vld [vmem:[#allocation7 + $0x1c] sm:$0xf] }
  0x4c   :  { %v103_v8 = vsub.f32 0.0, %v83_v0  ;;  %v104_v9 = vsub.f32 0.0, %v84_v1  ;;  %v105_v10 = vsub.f32 0.0, %v85_v2  ;;  %v106_v11 = vsub.f32 0.0, %v86_v3  ;;  %v73_v24 = vld [vmem:[#allocation2] sm:$0xf] }
  0x4d   :  { %v107_v12 = vsub.f32 0.0, %v564_v4  ;;  %v108_v13 = vsub.f32 0.0, %v566_v5  ;;  %v109_v14 = vsub.f32 0.0, %v568_v6  ;;  %v110_v18 = vsub.f32 0.0, %v570_v7  ;;  %v81_v25 = vld [vmem:[#allocation5] sm:$0xf] }
  0x4e   :  { %v111_v15 = vmul.f32 1.442695, %v103_v8  ;;  %v113_v16 = vmul.f32 1.442695, %v104_v9  ;;  %v115_v17 = vmul.f32 1.442695, %v105_v10  ;;  %v95_v32 = vsub.f32 %v73_v24, %v81_v25 }
  0x4f   :  { %v117_v19 = vmul.f32 1.442695, %v106_v11  ;;  %v119_v20 = vmul.f32 1.442695, %v107_v12  ;;  %v121_v21 = vmul.f32 1.442695, %v108_v13 }
  0x50   :  { %306 = vpow2.f32 %v111_v15  ;;  %v123_v22 = vmul.f32 1.442695, %v109_v14  ;;  %v125_v23 = vmul.f32 1.442695, %v110_v18  ;;  %v74_v26 = vld [vmem:[#allocation2 + $0x4] sm:$0xf] }
  0x51   :  { %308 = vpow2.f32 %v113_v16  ;;  %v82_v27 = vld [vmem:[#allocation5 + $0x4] sm:$0xf]  ;;  %v75_v28 = vld [vmem:[#allocation2 + $0x8] sm:$0xf]  ;;  %v77_v29 = vld [vmem:[#allocation2 + $0x10] sm:$0xf] }
  0x52   :  { %310 = vpow2.f32 %v115_v17  ;;  %v79_v30 = vld [vmem:[#allocation2 + $0x18] sm:$0xf]  ;;  %v76_v31 = vld [vmem:[#allocation2 + $0xc] sm:$0xf]  ;;  %v78_v34 = vld [vmem:[#allocation2 + $0x14] sm:$0xf]  ;;  %v96_v36 = vsub.f32 %v74_v26, %v82_v27  ;;  %v97_v38 = vsub.f32 %v75_v28, %v81_v25  ;;  %v99_v39 = vsub.f32 %v77_v29, %v81_v25 }
  0x53   :  { %312 = vpow2.f32 %v117_v19  ;;  %v80_v35 = vld [vmem:[#allocation2 + $0x1c] sm:$0xf]  ;;  %vm151_vm0 = vcmask 1043456   ;;  %v101_v40 = vsub.f32 %v79_v30, %v81_v25  ;;  %v98_v43 = vsub.f32 %v76_v31, %v82_v27  ;;  %v91_v19 = vld [vmem:[#allocation8] sm:$0xf]  ;;  %s464_s3 = smov [#allocation10]  }
  0x54   :  { %314 = vpow2.f32 %v119_v20  ;;  %v164_v45 = vsel %vm151_vm0, %v83_v0, 0.0  ;;  %v165_v46 = vsel %vm151_vm0, %v84_v1, 0.0  ;;  %v100_v48 = vsub.f32 %v78_v34, %v82_v27  ;;  %v92_v28 = vld [vmem:[#allocation8 + $0x4] sm:$0xf]  ;;  %s288_s27 = sshll.u32 %s464_s3, 4  ;;  %s289_s27 = int_to_ptr.vmem [resolvable:$true] %s288_s27 }
  0x55   :  { %316 = vpow2.f32 %v121_v21  ;;  %v102_v49 = vsub.f32 %v80_v35, %v82_v27  ;;  %v167_v55 = vsel %vm151_vm0, %v85_v2, 0.0  ;;  %v168_v56 = vsel %vm151_vm0, %v86_v3, 0.0  ;;  %s428_s28 = scalar_lea.vmem %s289_s27, 128  ;;  %p433_p5 = scmp.lt.s32.totalorder %s289_s27, %s289_s27 }
  0x56   :  { %318 = vpow2.f32 %v123_v22  ;;  %v166_v61 = vadd.f32 %v165_v46, %v164_v45  ;;  %v170_v2 = vsel %vm151_vm0, %v564_v4, 0.0  ;;  %v169_v31 = vadd.f32 %v168_v56, %v167_v55  ;;  %p429_p4 = scmp.ne.s32.totalorder %s289_s27, %s428_s28  ;;  %p434_p6 = scmp.lt.s32.totalorder %s428_s28, %s428_s28 }
  0x57   :  { %320 = vpow2.f32 %v125_v23  ;;  %v171_v23 = vsel %vm151_vm0, %v566_v5, 0.0  ;;  %v173_v5 = vsel %vm151_vm0, %v568_v6, 0.0  ;;  %vm275_vm1 = vcmask 1040384  }
  0x58   :  { %vm277_vm2 = vcmask 1041408   ;;  %vm279_vm3 = vcmask 1042432   ;;  %p435_p7 = por %p434_p6, %p433_p5 }
  0x5a   :  { %v576_v33 = vpop.eup %306  ;;  %p436_p8 = pnand %p435_p7, %p429_p4 }
  0x5b   :  { %v578_v37 = vpop.eup %308  ;;  %v127_v41 = vmin.f32 %v576_v33, 10000.0 }
  0x5c   :  { %v581_v42 = vpop.eup %310  ;;  %v128_v44 = vmin.f32 %v578_v37, 10000.0 }
  0x5d   :  { %v586_v47 = vpop.eup %312  ;;  %v129_v50 = vmin.f32 %v581_v42, 10000.0  ;;  %v135_v51 = vmul.f32 %v127_v41, %v95_v32 }
  0x5e   :  { %v591_v52 = vpop.eup %314  ;;  %v130_v53 = vmin.f32 %v586_v47, 10000.0  ;;  %v136_v54 = vmul.f32 %v128_v44, %v96_v36 }
  0x5f   :  { %v598_v57 = vpop.eup %316  ;;  %v131_v58 = vmin.f32 %v591_v52, 10000.0  ;;  %v137_v59 = vmul.f32 %v129_v50, %v97_v38  ;;  %v143_v60 = vmul.f32 %v135_v51, %v135_v51  ;;  %v93_v38 = vld [vmem:[#allocation8 + $0x8] sm:$0xf]  ;;  %v94_v51 = vld [vmem:[#allocation8 + $0xc] sm:$0xf] }
  0x60   :  { %v603_v62 = vpop.eup %318  ;;  %v132_v63 = vmin.f32 %v598_v57, 10000.0  ;;  %v138_v0 = vmul.f32 %v130_v53, %v98_v43  ;;  %v144_v1 = vmul.f32 %v136_v54, %v136_v54  ;;  %v174_v43 = vsel %vm151_vm0, %v570_v7, 0.0 }
  0x61   :  { %v610_v3 = vpop.eup %320  ;;  %v133_v8 = vmin.f32 %v603_v62, 10000.0  ;;  %v139_v9 = vmul.f32 %v131_v58, %v99_v39  ;;  %v145_v10 = vmul.f32 %v137_v59, %v137_v59  ;;  %v152_v11 = vsel %vm151_vm0, %v143_v60, 0.0 }
  0x62   :  { %v134_v12 = vmin.f32 %v610_v3, 10000.0  ;;  %v140_v13 = vmul.f32 %v132_v63, %v100_v48  ;;  %v146_v14 = vmul.f32 %v138_v0, %v138_v0  ;;  %v153_v15 = vsel %vm151_vm0, %v144_v1, 0.0 }
  0x63   :  { %v141_v4 = vmul.f32 %v133_v8, %v101_v40  ;;  %v147_v16 = vmul.f32 %v139_v9, %v139_v9  ;;  %v154_v17 = vadd.f32 %v153_v15, %v152_v11  ;;  %v155_v18 = vsel %vm151_vm0, %v145_v10, 0.0 }
  0x64   :  { %v142_v20 = vmul.f32 %v134_v12, %v102_v49  ;;  %v148_v21 = vmul.f32 %v140_v13, %v140_v13  ;;  %v156_v22 = vsel %vm151_vm0, %v146_v14, 0.0  ;;  %v172_v40 = vadd.f32 %v171_v23, %v170_v2 }
  0x65   :  { %v149_v24 = vmul.f32 %v141_v4, %v141_v4  ;;  %v157_v25 = vadd.f32 %v156_v22, %v155_v18  ;;  %v158_v26 = vsel %vm151_vm0, %v147_v16, 0.0  ;;  %v176_v27 = vmul.f32 -0.5, %v154_v17 }
  0x66   :  { %v150_v29 = vmul.f32 %v142_v20, %v142_v20  ;;  %v159_v30 = vsel %vm151_vm0, %v148_v21, 0.0  ;;  %v175_v54 = vadd.f32 %v174_v43, %v173_v5  ;;  %v218_v9 = vmul.f32 1.442695, %v91_v19 }
  0x67   :  { %v160_v32 = vadd.f32 %v159_v30, %v158_v26  ;;  %v161_v34 = vsel %vm151_vm0, %v149_v24, 0.0  ;;  %v177_v35 = vmul.f32 -0.5, %v157_v25  ;;  %v180_v36 = vadd.f32 %v176_v27, %v91_v19 }
  0x68   :  { %v162_v39 = vsel %vm151_vm0, %v150_v29, 0.0  ;;  %v220_v7 = vmul.f32 1.442695, %v92_v28  ;;  %322 = vpow2.f32 %v218_v9  ;;  %v222_v14 = vmul.f32 1.442695, %v93_v38 }
  0x69   :  { %v163_v45 = vadd.f32 %v162_v39, %v161_v34  ;;  %v178_v46 = vmul.f32 -0.5, %v160_v32  ;;  %v181_v48 = vadd.f32 %v177_v35, %v92_v28  ;;  %v184_v49 = vsub.f32 %v180_v36, %v166_v61 }
  0x6a   :  { %324 = vpow2.f32 %v220_v7  ;;  %v224_v4 = vmul.f32 1.442695, %v94_v51  ;;  %v226_v20 = vsel %vm151_vm0, %v127_v41, 0.0  ;;  %v227_v25 = vsel %vm151_vm0, %v128_v44, 0.0 }
  0x6b   :  { %v179_v55 = vmul.f32 -0.5, %v163_v45  ;;  %v182_v56 = vadd.f32 %v178_v46, %v93_v38  ;;  %v185_v59 = vsub.f32 %v181_v48, %v169_v31  ;;  %v188_v1 = vsel %vm151_vm0, %v184_v49, -inf }
  0x6c   :  { %326 = vpow2.f32 %v222_v14  ;;  %v229_v26 = vsel %vm151_vm0, %v129_v50, 0.0  ;;  %v230_v27 = vsel %vm151_vm0, %v130_v53, 0.0  ;;  %v228_v41 = vadd.f32 %v227_v25, %v226_v20 }
  0x6d   :  { %v183_v60 = vadd.f32 %v179_v55, %v94_v51  ;;  %v186_v0 = vsub.f32 %v182_v56, %v172_v40  ;;  %v189_v2 = vsel %vm151_vm0, %v185_v59, -inf  ;;  %328 = vpow2.f32 %v224_v4 }
  0x6e   :  { %v192_v11 = vmax.f32 %v188_v1, %v189_v2  ;;  %v231_v28 = vadd.f32 %v230_v27, %v229_v26  ;;  %v232_v37 = vsel %vm151_vm0, %v131_v58, 0.0  ;;  %v233_v42 = vsel %vm151_vm0, %v132_v63, 0.0 }
  0x6f   :  { %v187_v6 = vsub.f32 %v183_v60, %v175_v54  ;;  %v190_v10 = vsel %vm151_vm0, %v186_v0, -inf  ;;  %v234_v44 = vadd.f32 %v233_v42, %v232_v37  ;;  %v235_v30 = vsel %vm151_vm0, %v133_v8, 0.0 }
  0x70   :  { %v236_v31 = vsel %vm151_vm0, %v134_v12, 0.0 }
  0x71   :  { %v191_v13 = vsel %vm151_vm0, %v187_v6, -inf  ;;  %v237_v34 = vadd.f32 %v236_v31, %v235_v30 }
  0x72   :  { %v193_v61 = vmax.f32 %v190_v10, %v191_v13  ;;  %v323_v33 = vpop.eup %322 }
  0x73   :  { %v238_v47 = vmul.f32 %v323_v33, %v228_v41  ;;  %v262_v38 = vsel %vm151_vm0, %v323_v33, 0.0 }
  0x74   :  { %v640_v15 = vmax.f32 %v192_v11, %v193_v61  ;;  %v325_v29 = vpop.eup %324 }
  0x75   :  { %v239_v50 = vmul.f32 %v325_v29, %v231_v28  ;;  %v249_v57 = vsel %vm151_vm0, %v238_v47, 0.0  ;;  %v263_v62 = vsel %vm151_vm0, %v325_v29, 0.0 }
  0x76   :  { %v195_v16 = vsub.f32 %v184_v49, %v640_v15  ;;  %v196_v17 = vsub.f32 %v185_v59, %v640_v15  ;;  %v197_v18 = vsub.f32 %v186_v0, %v640_v15  ;;  %v198_v19 = vsub.f32 %v187_v6, %v640_v15  ;;  %v327_v53 = vpop.eup %326 }
  0x77   :  { %v329_v32 = vpop.eup %328  ;;  %v240_v58 = vmul.f32 %v327_v53, %v234_v44  ;;  %v250_v63 = vsel %vm151_vm0, %v239_v50, 0.0  ;;  %v264_v48 = vadd.f32 %v263_v62, %v262_v38  ;;  %v265_v51 = vsel %vm151_vm0, %v327_v53, 0.0 }
  0x78   :  { %v199_v21 = vmul.f32 1.442695, %v195_v16  ;;  %v201_v22 = vmul.f32 1.442695, %v196_v17  ;;  %v203_v23 = vmul.f32 1.442695, %v197_v18  ;;  %v251_v5 = vadd.f32 %v250_v63, %v249_v57 }
  0x79   :  { %v205_v24 = vmul.f32 1.442695, %v198_v19  ;;  %v241_v45 = vmul.f32 %v329_v32, %v237_v34  ;;  %v252_v46 = vsel %vm151_vm0, %v240_v58, 0.0  ;;  %v266_v59 = vadd.f32 %v265_v51, %v264_v48 }
  0x7a   :  { %330 = vpow2.f32 %v199_v21  ;;  %v253_v55 = vadd.f32 %v252_v46, %v251_v5  ;;  %v267_v60 = vsel %vm151_vm0, %v329_v32, 0.0 }
  0x7b   :  { %332 = vpow2.f32 %v201_v22  ;;  %v254_v56 = vsel %vm151_vm0, %v241_v45, 0.0  ;;  %v268_v1 = vadd.f32 %v267_v60, %v266_v59 }
  0x7c   :  { %334 = vpow2.f32 %v203_v23  ;;  %v255_v0 = vadd.f32 %v254_v56, %v253_v55 }
  0x7d   :  { %336 = vpow2.f32 %v205_v24  ;;  %v269_v9 = vrot.slane %v268_v1, 4 }
  0x7e   :  { %v256_v2 = vrot.slane %v255_v0, 4 }
  0x7f   :  { %v270_v11 = vadd.f32 %v269_v9, %v268_v1 }
  0x80   :  { %v257_v10 = vadd.f32 %v256_v2, %v255_v0 }
  0x81   :  { %v271_v4 = vrot.slane %v270_v11, 2 }
  0x82   :  { %v258_v61 = vrot.slane %v257_v10, 2 }
  0x83   :  { %v272_v19 = vadd.f32 %v271_v4, %v270_v11 }
  0x84   :  { %v331_v52 = vpop.eup %330  ;;  %v259_v18 = vadd.f32 %v258_v61, %v257_v10 }
  0x85   :  { %v333_v35 = vpop.eup %332  ;;  %v207_v36 = vsel %vm151_vm0, %v331_v52, 0.0  ;;  %v273_v23 = vrot.slane %v272_v19, 1 }
  0x86   :  { %v335_v8 = vpop.eup %334  ;;  %v208_v3 = vsel %vm151_vm0, %v333_v35, 0.0  ;;  %v260_v22 = vrot.slane %v259_v18, 1 }
  0x87   :  { %v337_v39 = vpop.eup %336  ;;  %v209_v12 = vadd.f32 %v208_v3, %v207_v36  ;;  %v210_v40 = vsel %vm151_vm0, %v335_v8, 0.0  ;;  %v274_v27 = vadd.f32 %v273_v23, %v272_v19 }
  0x88   :  { %v212_v43 = vsel %vm151_vm0, %v337_v39, 0.0  ;;  %v261_v26 = vadd.f32 %v260_v22, %v259_v18 }
  0x89   :  { %v211_v49 = vadd.f32 %v210_v40, %v209_v12 }
  0x8b   :  { %v213_v54 = vadd.f32 %v212_v43, %v211_v49 }
  0x8d   :  { %338 = vlog2.f32 %v213_v54 }
  0x97   :  { %v339_v6 = vpop.eup %338 }
  0x98   :  { %v215_v7 = vmul.f32 0.6931472, %v339_v6 }
  0x9a   :  { %v216_v13 = vadd.f32 %v215_v7, %v640_v15 }
  0x9c   :  { %v217_v14 = vsub.f32 0.0, %v216_v13 }
  0x9e   :  { %v242_v16 = vsel %vm151_vm0, %v217_v14, 0.0 }
  0x9f   :  { %v243_v17 = vrot.slane %v242_v16, 4 }
  0xa1   :  { %v244_v20 = vadd.f32 %v243_v17, %v242_v16 }
  0xa3   :  { %v245_v21 = vrot.slane %v244_v20, 2 }
  0xa5   :  { %v246_v24 = vadd.f32 %v245_v21, %v244_v20 }
  0xa7   :  { %v247_v25 = vrot.slane %v246_v24, 1 }
  0xa9   :  { %v248_v33 = vadd.f32 %v247_v25, %v246_v24 }
  0xab   :  { %v276_v15 = vsel %vm275_vm1, %v248_v33, %v261_v26 }
  0xac   :  { %v278_v41 = vsel %vm277_vm2, %v276_v15, %v274_v27 }
  0xad   :  { %v280_v28 = vsel %vm279_vm3, %v278_v41, 0.0 }
  0xae   :  { %281 = vst [vmem:[#allocation10] sm:$0xff] %v280_v28 }
  0xaf   :  { %439 = shalt.err (!%p436_p8)
}
  0xb0   :  { %s440_s13 = scalar_lea.hbm %s700_s4, 128 }
  0xb1   :  { %p441_p9 = scmp.ne.s32.totalorder %s700_s4, %s440_s13  ;;  %p444_p10 = scmp.lt.u32.totalorder %s440_s13, %s700_s4 }
  0xb3   :  { %p446_p11 = pnand %p444_p10, %p441_p9 }
  0xb5   :  { %449 = shalt.err (!%p446_p11)
}
  0xb6   :  { %291 = dma.vmem_to_hbm [thread:$0]  %s289_s27, 128, %s700_s4, [#allocation4]  }
  0xb7   :  { %456 = dma.done.wait [#allocation4], 128  }
  0xb8   :  { %457 = vsyncadd [#allocation4], 4294967168 }
  0xb9   :  { %295 = vsyncpa [#allocation3], 1 }
  0xba   :  { %296 = vsyncpa [#allocation6], 1 }
  0xbb   :  { %297 = vsyncpa [#allocation9], 1 }
  0xbc   :  { %298 = vsyncpa [#allocation4], 1 }

</bundles_post_ra>
